<compile_context>
chip_gen: v7x
topology: tpu7x:2x2x1
jax: 0.10.0
libtpu: 0.0.40
codegen_flags: <defaults>
</compile_context>

<pallas_src>
import math

import jax
import jax.numpy as jnp
from jax.experimental import pallas as pl
from jax.experimental.pallas import tpu as pltpu

_VMEM_LIMIT_BYTES = 32 * 1024 * 1024  # sized against v7x (64 MiB physical VMEM)
_TARGET_ROW_TILE = 512                # per review: big M tiles amortize DMA


def _round_up(x, m):
    return ((x + m - 1) // m) * m


def _choose_row_tile(m_rows, target=_TARGET_ROW_TILE):
    """Largest multiple-of-8 divisor of m_rows <= target, preferring >=2 grid steps."""
    divisors = [d for d in range(8, min(target, m_rows) + 1, 8) if m_rows % d == 0]
    proper = [d for d in divisors if d < m_rows]
    if proper and m_rows >= 16:
        return proper[-1]           # guarantees >= 2 grid steps (v7x: 2 TCs)
    return divisors[-1] if divisors else m_rows


def _pad_rows(mat, mp):
    m = mat.shape[0]
    if m == mp:
        return mat
    return jnp.pad(mat, ((0, mp - m), (0, 0)))


# ---------------------------------------------------------------------------
# Pallas kernels
# ---------------------------------------------------------------------------
def _matmul_bias_kernel(p_ref, w_ref, b_ref, o_ref):
    # p: (tm, K) bf16 patches, w: (K, Cout) bf16 (BN scale pre-folded),
    # b: (1, Cout) f32.  f32 accumulate + f32 epilogue, cast at the store.
    acc = jnp.dot(p_ref[...], w_ref[...], preferred_element_type=jnp.float32)
    o_ref[...] = (acc + b_ref[...]).astype(o_ref.dtype)


def _conv3_convout_kernel(p_ref, w3_ref, b3_ref, w4_ref, b4_ref, xg_ref, pg_ref):
    # conv3 (3x3, BN folded) + conv_out (1x1 -> 1 channel, BN folded) fused:
    # the 1-channel conv_out result is produced from the VMEM-resident conv3
    # tile and never round-trips through HBM as a separate layer.
    xg = jnp.dot(p_ref[...], w3_ref[...], preferred_element_type=jnp.float32)
    xg = xg + b3_ref[...]
    xg_ref[...] = xg.astype(xg_ref.dtype)
    pg = jnp.sum(xg * w4_ref[...], axis=-1, keepdims=True) + b4_ref[...]
    pg_ref[...] = pg.astype(pg_ref.dtype)


# ---------------------------------------------------------------------------
# pallas_call wrappers
# ---------------------------------------------------------------------------
def _conv_bn_matmul(patches, w_folded, bias, out_dtype):
    """patches: (M, K) bf16, w_folded: (K, Cout) bf16, bias: (Cout,) f32."""
    M, K = patches.shape
    Cout = w_folded.shape[1]
    Mp = _round_up(M, 8)
    tm = _choose_row_tile(Mp)
    p = _pad_rows(patches, Mp)
    out = pl.pallas_call(
        _matmul_bias_kernel,
        out_shape=jax.ShapeDtypeStruct((Mp, Cout), out_dtype),
        grid=(Mp // tm,),
        in_specs=[
            pl.BlockSpec((tm, K), lambda i: (i, 0)),      # K at natural size
            pl.BlockSpec((K, Cout), lambda i: (0, 0)),
            pl.BlockSpec((1, Cout), lambda i: (0, 0)),
        ],
        out_specs=pl.BlockSpec((tm, Cout), lambda i: (i, 0)),
        compiler_params=pltpu.CompilerParams(
            dimension_semantics=("parallel",),
            vmem_limit_bytes=_VMEM_LIMIT_BYTES),
    )(p, w_folded, bias.reshape(1, Cout).astype(jnp.float32))
    return out[:M]


def _conv3_convout(patches, w3_folded, b3, w4_row, b4):
    """Fused conv3 + conv_out.  patches: (M, K) bf16, w3: (K, 32) bf16,
    b3: (32,) f32, w4_row: (1, 32) f32 (scale folded), b4: (1,) f32."""
    M, K = patches.shape
    C3 = w3_folded.shape[1]
    Mp = _round_up(M, 8)
    tm = _choose_row_tile(Mp)
    p = _pad_rows(patches, Mp)
    xg, pg = pl.pallas_call(
        _conv3_convout_kernel,
        out_shape=(jax.ShapeDtypeStruct((Mp, C3), jnp.float32),
                   jax.ShapeDtypeStruct((Mp, 1), jnp.float32)),
        grid=(Mp // tm,),
        in_specs=[
            pl.BlockSpec((tm, K), lambda i: (i, 0)),
            pl.BlockSpec((K, C3), lambda i: (0, 0)),
            pl.BlockSpec((1, C3), lambda i: (0, 0)),
            pl.BlockSpec((1, C3), lambda i: (0, 0)),
            pl.BlockSpec((1, 1), lambda i: (0, 0)),
        ],
        out_specs=(pl.BlockSpec((tm, C3), lambda i: (i, 0)),
                   pl.BlockSpec((tm, 1), lambda i: (i, 0))),
        compiler_params=pltpu.CompilerParams(
            dimension_semantics=("parallel",),
            vmem_limit_bytes=_VMEM_LIMIT_BYTES),
    )(p, w3_folded, b3.reshape(1, C3).astype(jnp.float32),
      w4_row.astype(jnp.float32), b4.reshape(1, 1).astype(jnp.float32))
    return xg[:M], pg[:M]


# ---------------------------------------------------------------------------
# Wrapper glue: BN folding and im2col (plain JAX)
# ---------------------------------------------------------------------------
def _fold_bn(w_oihw, gamma, beta, mean, var, eps=1e-5):
    """Fold eval-mode BN into the conv weight; returns (K, Cout) f32 + bias."""
    cout, cin, kh, kw = w_oihw.shape
    scale = gamma / jnp.sqrt(var + eps)
    bias = beta - mean * scale
    w_mat = jnp.transpose(w_oihw, (2, 3, 1, 0)).reshape(kh * kw * cin, cout)
    w_mat = w_mat * scale[None, :]     # BN scale folded here, not in-kernel
    return w_mat, bias


def _im2col(x_nhwc, kh, kw, stride, pad):
    # TODO(synk): move this tap extraction into the kernel at real image sizes
    # to avoid the kh*kw/stride^2 HBM read amplification.
    N, H, W, C = x_nhwc.shape
    xp = jnp.pad(x_nhwc, ((0, 0), (pad, pad), (pad, pad), (0, 0)))
    Ho = (H + 2 * pad - kh) // stride + 1
    Wo = (W + 2 * pad - kw) // stride + 1
    cols = []
    for i in range(kh):
        for j in range(kw):
            cols.append(xp[:, i:i + stride * Ho:stride, j:j + stride * Wo:stride, :])
    patches = jnp.stack(cols, axis=3).reshape(N * Ho * Wo, kh * kw * C)
    return patches, (N, Ho, Wo)


# ---------------------------------------------------------------------------
# Parameter construction (deterministic, synthetic)
# ---------------------------------------------------------------------------
def _make_conv_bn_params(key, cin, cout, k):
    kw_key, g_key, b_key, m_key, v_key = jax.random.split(key, 5)
    fan_in = cin * k * k
    w = jax.random.normal(kw_key, (cout, cin, k, k), jnp.float32) / math.sqrt(fan_in)
    gamma = 1.0 + 0.1 * jax.random.normal(g_key, (cout,), jnp.float32)
    beta = 0.1 * jax.random.normal(b_key, (cout,), jnp.float32)
    mean = 0.1 * jax.random.normal(m_key, (cout,), jnp.float32)
    var = jnp.abs(1.0 + 0.1 * jax.random.normal(v_key, (cout,), jnp.float32))
    return dict(w=w, gamma=gamma, beta=beta, mean=mean, var=var)


def init_texture_encoder_params(key):
    k1, k2, k3, k4 = jax.random.split(key, 4)
    return dict(
        conv1=_make_conv_bn_params(k1, 3, 64, 7),
        conv2=_make_conv_bn_params(k2, 64, 64, 3),
        conv3=_make_conv_bn_params(k3, 64, 32, 3),
        conv_out=_make_conv_bn_params(k4, 32, 1, 1),
    )


# ---------------------------------------------------------------------------
# TextureEncoder forward
# ---------------------------------------------------------------------------
@jax.jit
def texture_encoder_forward(params, x_nchw):
    # NCHW (PyTorch) -> NHWC, activations in bf16 for the MXU path.
    x = jnp.transpose(x_nchw, (0, 2, 3, 1)).astype(jnp.bfloat16)

    # conv1: 3 -> 64, 7x7, stride 2, pad 3
    p = params["conv1"]
    w1, b1 = _fold_bn(p["w"], p["gamma"], p["beta"], p["mean"], p["var"])
    pat1, (N, H1, W1) = _im2col(x, 7, 7, 2, 3)
    f1 = _conv_bn_matmul(pat1, w1.astype(jnp.bfloat16), b1, jnp.bfloat16)
    f1 = f1.reshape(N, H1, W1, 64)

    # conv2: 64 -> 64, 3x3, stride 2, pad 1
    p = params["conv2"]
    w2, b2 = _fold_bn(p["w"], p["gamma"], p["beta"], p["mean"], p["var"])
    pat2, (N, H2, W2) = _im2col(f1, 3, 3, 2, 1)
    f2 = _conv_bn_matmul(pat2, w2.astype(jnp.bfloat16), b2, jnp.bfloat16)
    f2 = f2.reshape(N, H2, W2, 64)

    # conv3 (64 -> 32, 3x3, s2, p1) + conv_out (32 -> 1, 1x1) fused in one call
    p = params["conv3"]
    w3, b3 = _fold_bn(p["w"], p["gamma"], p["beta"], p["mean"], p["var"])
    p = params["conv_out"]
    w4, b4 = _fold_bn(p["w"], p["gamma"], p["beta"], p["mean"], p["var"])
    w4_row = w4[:, 0].reshape(1, 32)   # (Cin=32,) with BN scale folded
    pat3, (N, H3, W3) = _im2col(f2, 3, 3, 2, 1)
    xg_flat, pg_flat = _conv3_convout(pat3, w3.astype(jnp.bfloat16), b3, w4_row, b4)

    xg = xg_flat.reshape(N, H3, W3, 32)
    pg = pg_flat.reshape(N, H3, W3, 1)
    # back to NCHW to match the PyTorch module's output convention
    return jnp.transpose(xg, (0, 3, 1, 2)), jnp.transpose(pg, (0, 3, 1, 2))


# ---------------------------------------------------------------------------
# Pure-JAX f32 reference (module semantics)
# ---------------------------------------------------------------------------
def _ref_conv_bn(x_nchw, p, stride, pad, eps=1e-5):
    y = jax.lax.conv_general_dilated(
        x_nchw, p["w"], window_strides=(stride, stride),
        padding=((pad, pad), (pad, pad)),
        dimension_numbers=("NCHW", "OIHW", "NCHW"))
    scale = p["gamma"] / jnp.sqrt(p["var"] + eps)
    bias = p["beta"] - p["mean"] * scale
    return y * scale[None, :, None, None] + bias[None, :, None, None]


def _ref_forward(params, x_nchw):
    feat = _ref_conv_bn(x_nchw, params["conv1"], 2, 3)
    feat = _ref_conv_bn(feat, params["conv2"], 2, 1)
    xg = _ref_conv_bn(feat, params["conv3"], 2, 1)
    pg = _ref_conv_bn(xg, params["conv_out"], 1, 0)
    return xg, pg


if __name__ == "__main__":
    key = jax.random.PRNGKey(0)
    pkey, xkey = jax.random.split(key)

    params = init_texture_encoder_params(pkey)
    # Small input consistent with the module: batch=2, 3 channels, 16x16.
    x = jax.random.normal(xkey, (2, 3, 16, 16), jnp.float32)

    xg, pg = texture_encoder_forward(params, x)
    xg = jax.block_until_ready(xg)
    pg = jax.block_until_ready(pg)

    assert xg.shape == (2, 32, 2, 2), xg.shape
    assert pg.shape == (2, 1, 2, 2), pg.shape

    xg_ref, pg_ref = _ref_forward(params, x)
    # bf16 matmul inputs through 3 chained layers -> loosened tolerances
    # (per review) against the f32 reference.
    assert jnp.allclose(xg, xg_ref, rtol=5e-2, atol=1e-1), \
        float(jnp.max(jnp.abs(xg - xg_ref)))
    assert jnp.allclose(pg, pg_ref, rtol=5e-2, atol=1e-1), \
        float(jnp.max(jnp.abs(pg - pg_ref)))

    print("KERNEL_OK")
</pallas_src>

<mosaic_0001>
module attributes {stable_mosaic.version = 11 : i64} {
  func.func @_matmul_bias_kernel(%arg0: i32, %arg1: memref<64x147xbf16, #tpu.memory_space<vmem>>, %arg2: memref<147x64xbf16, #tpu.memory_space<vmem>>, %arg3: memref<1x64xf32, #tpu.memory_space<vmem>>, %arg4: memref<64x64xbf16, #tpu.memory_space<vmem>>) attributes {dimension_semantics = [#tpu.dimension_semantics<parallel>], iteration_bounds = array<i64: 2>, scalar_prefetch = 0 : i64, scratch_operands = 0 : i64, tpu.core_type = #tpu.core_type<tc>, window_params = [{transform_indices = @transform_0, window_bounds = array<i64: 64, 147>}, {pipeline_mode = #tpu.pipeline_mode<synchronous>, transform_indices = @transform_1, window_bounds = array<i64: 147, 64>}, {pipeline_mode = #tpu.pipeline_mode<synchronous>, transform_indices = @transform_2, window_bounds = array<i64: 1, 64>}, {transform_indices = @transform_3, window_bounds = array<i64: 64, 64>}]} {
    %c0 = arith.constant 0 : index
    %c0_0 = arith.constant 0 : index
    %0 = vector.load %arg1[%c0, %c0_0] : memref<64x147xbf16, #tpu.memory_space<vmem>>, vector<64x147xbf16>
    %c0_1 = arith.constant 0 : index
    %c0_2 = arith.constant 0 : index
    %1 = vector.load %arg2[%c0_1, %c0_2] : memref<147x64xbf16, #tpu.memory_space<vmem>>, vector<147x64xbf16>
    %cst = arith.constant dense<0.000000e+00> : vector<64x64xf32>
    %2 = tpu.matmul %0, %1, %cst {dimension_numbers = #tpu.dot_dimension_numbers<[1], [0], [0], [1], [0, 0, 1, 1], [], []>} : vector<64x147xbf16>, vector<147x64xbf16>, vector<64x64xf32> -> vector<64x64xf32>
    %c0_3 = arith.constant 0 : index
    %c0_4 = arith.constant 0 : index
    %3 = vector.load %arg3[%c0_3, %c0_4] : memref<1x64xf32, #tpu.memory_space<vmem>>, vector<1x64xf32>
    %4 = vector.broadcast %3 : vector<1x64xf32> to vector<64x64xf32>
    %5 = arith.addf %2, %4 : vector<64x64xf32>
    %6 = arith.truncf %5 : vector<64x64xf32> to vector<64x64xbf16>
    %c0_5 = arith.constant 0 : index
    %c0_6 = arith.constant 0 : index
    %7 = vector.load %arg4[%c0_5, %c0_6] : memref<64x64xbf16, #tpu.memory_space<vmem>>, vector<64x64xbf16>
    tpu.vector_store %arg4[%c0_5, %c0_6], %6 {strides = array<i32>} : memref<64x64xbf16, #tpu.memory_space<vmem>>, vector<64x64xbf16>,
    return
  }
  func.func @transform_0(%arg0: i32) -> (i32, i32) {
    %c0_i32 = arith.constant 0 : i32
    %c0_i32_0 = arith.constant 0 : i32
    return %arg0, %c0_i32 : i32, i32
  }
  func.func @transform_1(%arg0: i32) -> (i32, i32) {
    %c0_i32 = arith.constant 0 : i32
    %c0_i32_0 = arith.constant 0 : i32
    %c0_i32_1 = arith.constant 0 : i32
    return %c0_i32, %c0_i32_0 : i32, i32
  }
  func.func @transform_2(%arg0: i32) -> (i32, i32) {
    %c0_i32 = arith.constant 0 : i32
    %c0_i32_0 = arith.constant 0 : i32
    %c0_i32_1 = arith.constant 0 : i32
    return %c0_i32, %c0_i32_0 : i32, i32
  }
  func.func @transform_3(%arg0: i32) -> (i32, i32) {
    %c0_i32 = arith.constant 0 : i32
    %c0_i32_0 = arith.constant 0 : i32
    return %arg0, %c0_i32 : i32, i32
  }
}

module attributes {stable_mosaic.version = 11 : i64} {
  func.func @_matmul_bias_kernel(%arg0: i32, %arg1: memref<16x576xbf16, #tpu.memory_space<vmem>>, %arg2: memref<576x64xbf16, #tpu.memory_space<vmem>>, %arg3: memref<1x64xf32, #tpu.memory_space<vmem>>, %arg4: memref<16x64xbf16, #tpu.memory_space<vmem>>) attributes {dimension_semantics = [#tpu.dimension_semantics<parallel>], iteration_bounds = array<i64: 2>, scalar_prefetch = 0 : i64, scratch_operands = 0 : i64, tpu.core_type = #tpu.core_type<tc>, window_params = [{transform_indices = @transform_0, window_bounds = array<i64: 16, 576>}, {pipeline_mode = #tpu.pipeline_mode<synchronous>, transform_indices = @transform_1, window_bounds = array<i64: 576, 64>}, {pipeline_mode = #tpu.pipeline_mode<synchronous>, transform_indices = @transform_2, window_bounds = array<i64: 1, 64>}, {transform_indices = @transform_3, window_bounds = array<i64: 16, 64>}]} {
    %c0 = arith.constant 0 : index
    %c0_0 = arith.constant 0 : index
    %0 = vector.load %arg1[%c0, %c0_0] : memref<16x576xbf16, #tpu.memory_space<vmem>>, vector<16x576xbf16>
    %c0_1 = arith.constant 0 : index
    %c0_2 = arith.constant 0 : index
    %1 = vector.load %arg2[%c0_1, %c0_2] : memref<576x64xbf16, #tpu.memory_space<vmem>>, vector<576x64xbf16>
    %cst = arith.constant dense<0.000000e+00> : vector<16x64xf32>
    %2 = tpu.matmul %0, %1, %cst {dimension_numbers = #tpu.dot_dimension_numbers<[1], [0], [0], [1], [0, 0, 1, 1], [], []>} : vector<16x576xbf16>, vector<576x64xbf16>, vector<16x64xf32> -> vector<16x64xf32>
    %c0_3 = arith.constant 0 : index
    %c0_4 = arith.constant 0 : index
    %3 = vector.load %arg3[%c0_3, %c0_4] : memref<1x64xf32, #tpu.memory_space<vmem>>, vector<1x64xf32>
    %4 = vector.broadcast %3 : vector<1x64xf32> to vector<16x64xf32>
    %5 = arith.addf %2, %4 : vector<16x64xf32>
    %6 = arith.truncf %5 : vector<16x64xf32> to vector<16x64xbf16>
    %c0_5 = arith.constant 0 : index
    %c0_6 = arith.constant 0 : index
    %7 = vector.load %arg4[%c0_5, %c0_6] : memref<16x64xbf16, #tpu.memory_space<vmem>>, vector<16x64xbf16>
    tpu.vector_store %arg4[%c0_5, %c0_6], %6 {strides = array<i32>} : memref<16x64xbf16, #tpu.memory_space<vmem>>, vector<16x64xbf16>,
    return
  }
  func.func @transform_0(%arg0: i32) -> (i32, i32) {
    %c0_i32 = arith.constant 0 : i32
    %c0_i32_0 = arith.constant 0 : i32
    return %arg0, %c0_i32 : i32, i32
  }
  func.func @transform_1(%arg0: i32) -> (i32, i32) {
    %c0_i32 = arith.constant 0 : i32
    %c0_i32_0 = arith.constant 0 : i32
    %c0_i32_1 = arith.constant 0 : i32
    return %c0_i32, %c0_i32_0 : i32, i32
  }
  func.func @transform_2(%arg0: i32) -> (i32, i32) {
    %c0_i32 = arith.constant 0 : i32
    %c0_i32_0 = arith.constant 0 : i32
    %c0_i32_1 = arith.constant 0 : i32
    return %c0_i32, %c0_i32_0 : i32, i32
  }
  func.func @transform_3(%arg0: i32) -> (i32, i32) {
    %c0_i32 = arith.constant 0 : i32
    %c0_i32_0 = arith.constant 0 : i32
    return %arg0, %c0_i32 : i32, i32
  }
}

module attributes {stable_mosaic.version = 11 : i64} {
  func.func @_conv3_convout_kernel(%arg0: i32, %arg1: memref<8x576xbf16, #tpu.memory_space<vmem>>, %arg2: memref<576x32xbf16, #tpu.memory_space<vmem>>, %arg3: memref<1x32xf32, #tpu.memory_space<vmem>>, %arg4: memref<1x32xf32, #tpu.memory_space<vmem>>, %arg5: memref<1x1xf32, #tpu.memory_space<vmem>>, %arg6: memref<8x32xf32, #tpu.memory_space<vmem>>, %arg7: memref<8x1xf32, #tpu.memory_space<vmem>>) attributes {dimension_semantics = [#tpu.dimension_semantics<parallel>], iteration_bounds = array<i64: 1>, scalar_prefetch = 0 : i64, scratch_operands = 0 : i64, tpu.core_type = #tpu.core_type<tc>, window_params = [{transform_indices = @transform_0, window_bounds = array<i64: 8, 576>}, {pipeline_mode = #tpu.pipeline_mode<synchronous>, transform_indices = @transform_1, window_bounds = array<i64: 576, 32>}, {pipeline_mode = #tpu.pipeline_mode<synchronous>, transform_indices = @transform_2, window_bounds = array<i64: 1, 32>}, {pipeline_mode = #tpu.pipeline_mode<synchronous>, transform_indices = @transform_3, window_bounds = array<i64: 1, 32>}, {pipeline_mode = #tpu.pipeline_mode<synchronous>, transform_indices = @transform_4, window_bounds = array<i64: 1, 1>}, {transform_indices = @transform_5, window_bounds = array<i64: 8, 32>}, {transform_indices = @transform_6, window_bounds = array<i64: 8, 1>}]} {
    %c0 = arith.constant 0 : index
    %c0_0 = arith.constant 0 : index
    %0 = vector.load %arg1[%c0, %c0_0] : memref<8x576xbf16, #tpu.memory_space<vmem>>, vector<8x576xbf16>
    %c0_1 = arith.constant 0 : index
    %c0_2 = arith.constant 0 : index
    %1 = vector.load %arg2[%c0_1, %c0_2] : memref<576x32xbf16, #tpu.memory_space<vmem>>, vector<576x32xbf16>
    %cst = arith.constant dense<0.000000e+00> : vector<8x32xf32>
    %2 = tpu.matmul %0, %1, %cst {dimension_numbers = #tpu.dot_dimension_numbers<[1], [0], [0], [1], [0, 0, 1, 1], [], []>} : vector<8x576xbf16>, vector<576x32xbf16>, vector<8x32xf32> -> vector<8x32xf32>
    %c0_3 = arith.constant 0 : index
    %c0_4 = arith.constant 0 : index
    %3 = vector.load %arg3[%c0_3, %c0_4] : memref<1x32xf32, #tpu.memory_space<vmem>>, vector<1x32xf32>
    %4 = vector.broadcast %3 : vector<1x32xf32> to vector<8x32xf32>
    %5 = arith.addf %2, %4 : vector<8x32xf32>
    %c0_5 = arith.constant 0 : index
    %c0_6 = arith.constant 0 : index
    %6 = vector.load %arg6[%c0_5, %c0_6] : memref<8x32xf32, #tpu.memory_space<vmem>>, vector<8x32xf32>
    tpu.vector_store %arg6[%c0_5, %c0_6], %5 {strides = array<i32>} : memref<8x32xf32, #tpu.memory_space<vmem>>, vector<8x32xf32>,
    %c0_7 = arith.constant 0 : index
    %c0_8 = arith.constant 0 : index
    %7 = vector.load %arg4[%c0_7, %c0_8] : memref<1x32xf32, #tpu.memory_space<vmem>>, vector<1x32xf32>
    %8 = vector.broadcast %7 : vector<1x32xf32> to vector<8x32xf32>
    %9 = arith.mulf %5, %8 : vector<8x32xf32>
    %cst_9 = arith.constant dense<0.000000e+00> : vector<8xf32>
    %10 = vector.multi_reduction <add>, %9, %cst_9 [1] : vector<8x32xf32> to vector<8xf32>
    %11 = vector.shape_cast %10 : vector<8xf32> to vector<8x1xf32>
    %c0_10 = arith.constant 0 : index
    %c0_11 = arith.constant 0 : index
    %12 = vector.load %arg5[%c0_10, %c0_11] : memref<1x1xf32, #tpu.memory_space<vmem>>, vector<1x1xf32>
    %13 = vector.broadcast %12 : vector<1x1xf32> to vector<8x1xf32>
    %14 = arith.addf %11, %13 : vector<8x1xf32>
    %c0_12 = arith.constant 0 : index
    %c0_13 = arith.constant 0 : index
    %15 = vector.load %arg7[%c0_12, %c0_13] : memref<8x1xf32, #tpu.memory_space<vmem>>, vector<8x1xf32>
    tpu.vector_store %arg7[%c0_12, %c0_13], %14 {strides = array<i32>} : memref<8x1xf32, #tpu.memory_space<vmem>>, vector<8x1xf32>,
    return
  }
  func.func @transform_0(%arg0: i32) -> (i32, i32) {
    %c0_i32 = arith.constant 0 : i32
    %c0_i32_0 = arith.constant 0 : i32
    return %arg0, %c0_i32 : i32, i32
  }
  func.func @transform_1(%arg0: i32) -> (i32, i32) {
    %c0_i32 = arith.constant 0 : i32
    %c0_i32_0 = arith.constant 0 : i32
    %c0_i32_1 = arith.constant 0 : i32
    return %c0_i32, %c0_i32_0 : i32, i32
  }
  func.func @transform_2(%arg0: i32) -> (i32, i32) {
    %c0_i32 = arith.constant 0 : i32
    %c0_i32_0 = arith.constant 0 : i32
    %c0_i32_1 = arith.constant 0 : i32
    return %c0_i32, %c0_i32_0 : i32, i32
  }
  func.func @transform_3(%arg0: i32) -> (i32, i32) {
    %c0_i32 = arith.constant 0 : i32
    %c0_i32_0 = arith.constant 0 : i32
    %c0_i32_1 = arith.constant 0 : i32
    return %c0_i32, %c0_i32_0 : i32, i32
  }
  func.func @transform_4(%arg0: i32) -> (i32, i32) {
    %c0_i32 = arith.constant 0 : i32
    %c0_i32_0 = arith.constant 0 : i32
    %c0_i32_1 = arith.constant 0 : i32
    return %c0_i32, %c0_i32_0 : i32, i32
  }
  func.func @transform_5(%arg0: i32) -> (i32, i32) {
    %c0_i32 = arith.constant 0 : i32
    %c0_i32_0 = arith.constant 0 : i32
    return %arg0, %c0_i32 : i32, i32
  }
  func.func @transform_6(%arg0: i32) -> (i32, i32) {
    %c0_i32 = arith.constant 0 : i32
    %c0_i32_0 = arith.constant 0 : i32
    return %arg0, %c0_i32 : i32, i32
  }
}

</mosaic_0001>

<bundles_post_ra>
// kernel: texture_encoder_forward.3
= control target key start
LH: loop header
LB: loop body
LE: loop exit
PB: predicated region body
PF: predicated region fallthrough
CT: control target
= control target key end

     0   :  { %s621_s12 = smov 0   ;;  %s707_s0 = inlined_call_operand.vmem [shape: bf16[128,147], index: 0, kind: input, shape index: {}]   ;;  %s708_s1 = inlined_call_operand.vmem [shape: bf16[147,64], index: 1, kind: input, shape index: {}]   ;;  %s709_s2 = inlined_call_operand.vmem [shape: f32[1,64], index: 2, kind: input, shape index: {}]   ;;  %s710_s3 = inlined_call_operand.vmem [shape: bf16[128,64], index: 3, kind: output, shape index: {}]  }
   0x1 LB: > { %s487_s13 = sadd.s32 4294967295, %s597_s12   ;;  %p491_p0 = scmp.ge.s32.totalorder %s597_s12, 1  ;;  %s597_s12 = sphi %s621_s12, %s13_s12  }
   0x2   : > { %p139_p1 = scmp.lt.s32.totalorder %s597_s12, 3 }
   0x4   : > { %p140_p2 = pnand %p491_p0, %p139_p1 }
   0x5   : > { %v569_v0 = vld [vmem:[%s708_s1] sm:$0xff] (!%p140_p2)   ;;  %v599_v1 = vmov (!%p140_p2), 0   ;;  %v570_v2 = vld [vmem:[%s708_s1 + $0x8] sm:$0xff] (!%p140_p2)   ;;  %v571_v3 = vld [vmem:[%s708_s1 + $0x10] sm:$0xff] (!%p140_p2)   ;;  %s492_s20 = sshll.u32 (!%p140_p2), %s487_s13, 3  ;;  %vm305_vm0 = vcmask (!%p140_p2), 154624  }
   0x6   : > { %143 = sbr.rel (%p140_p2) target bundleno = 273 (0x111), region = 32  ;;  %325 = vmatprep.subr.bf16.mxu0 (!%p140_p2), %v599_v1  ;;  %539 = vmatprep.subr.bf16.mxu1 (!%p140_p2), %v599_v1  ;;  %p165_p3 = scmp.lt.s32.totalorder (!%p140_p2), %s492_s20, 15  ;;  %v572_v4 = vld [vmem:[%s708_s1 + $0x18] sm:$0xff] (!%p140_p2)   ;;  %v573_v5 = vld [vmem:[%s708_s1 + $0x20] sm:$0xff] (!%p140_p2)   ;;  %v574_v8 = vld [vmem:[%s708_s1 + $0x28] sm:$0xff] (!%p140_p2)   ;;  %vm318_vm1 = vcmask (!%p140_p2), 1040384  }
   0x7   : > { %326 = vmatpush1.bf16.msra.mxu0 (!%p140_p2), %v569_v0  ;;  %549 = vmatpush1.bf16.msra.mxu1 (!%p140_p2), %v569_v0  ;;  %v575_v9 = vld [vmem:[%s708_s1 + $0x30] sm:$0xff] (!%p140_p2)   ;;  %v576_v10 = vld [vmem:[%s708_s1 + $0x38] sm:$0xff] (!%p140_p2)   ;;  %vm319_vm2 = vcmask (!%p140_p2), 1041408   ;;  %v600_v11 = vmov (!%p140_p2), 65535   ;;  %v577_v13 = vld [vmem:[%s708_s1 + $0x40] sm:$0xff] (!%p140_p2)   ;;  %vm422_vm3 = vcmask (!%p140_p2), 519168  }
   0x8   : > { %327 = vmatprep.subr.bf16.mxu0 (!%p140_p2), %v599_v1  ;;  %540 = vmatprep.subr.bf16.mxu1 (!%p140_p2), %v599_v1  ;;  %v320_v12 = vsel (!%p140_p2), %vm318_vm1, 4294967295, %v600_v11  ;;  %v578_v14 = vld [vmem:[%s708_s1 + $0x48] ss:$0 sps:$4 sm:$0x33] (!%p140_p2)   ;;  %v497_v23 = vld [vmem:[%s709_s2] ss:$0 sm:$0xff] (!%p140_p2) }
   0x9   : > { %v321_v15 = vsel (!%p140_p2), %vm319_vm2, %v320_v12, 0 }
   0xa   : > { %v323_v16 = vand.u32 (!%p140_p2), %v578_v14, %v321_v15 }
   0xb   : > { %328 = vmatpush1.bf16.msra.mxu0 (!%p140_p2), %v570_v2  ;;  %550 = vmatpush1.bf16.msra.mxu1 (!%p140_p2), %v570_v2 }
   0xc   : > { %329 = vmatprep.subr.bf16.mxu0 (!%p140_p2), %v599_v1  ;;  %541 = vmatprep.subr.bf16.mxu1 (!%p140_p2), %v599_v1 }
   0xd   : > { %s712_s20 = smov (!%p165_p3, %s492_s20), 15 }
   0xe   : > { %s530_s23 = sshll.u32 %s712_s20, 3  ;;  %s496_s15 = sshll.u32 %s712_s20, 2 }
   0xf   : > { %330 = vmatpush1.bf16.msra.mxu0 %v571_v3  ;;  %551 = vmatpush1.bf16.msra.mxu1 %v571_v3  ;;  %s647_s26 = scalar_lea.vmem %s707_s0, %s530_s23  ;;  %s686_s18 = scalar_lea.vmem %s710_s3, %s496_s15 }
  0x10   : > { %331 = vmatprep.subr.bf16.mxu0 %v599_v1  ;;  %542 = vmatprep.subr.bf16.mxu1 %v599_v1  ;;  %v581_v6 = vld [vmem:[%s647_s26 + $0x4] ss:$8 sps:$4 sm:$0xff]   ;;  %v579_v17 = vld [vmem:[%s647_s26] ss:$8 sps:$4 sm:$0xff]   ;;  %v585_v19 = vld [vmem:[%s647_s26 + $0x14] ss:$8 sps:$4 sm:$0xff]  }
  0x11   : > { %v584_v7 = vld [vmem:[%s647_s26 + $0x24] ss:$8 sps:$4 sm:$0xff]   ;;  %516 = vmatprep.mubr.msk.bf16.mxu0 %vm305_vm0, %v581_v6  ;;  %v582_v18 = vld [vmem:[%s647_s26 + $0x20] ss:$8 sps:$4 sm:$0xff]   ;;  %v587_v20 = vld [vmem:[%s647_s26 + $0x34] ss:$8 sps:$4 sm:$0xff]  }
  0x12   : > { %518 = vmatprep.mubr.msk.bf16.mxu1 %vm305_vm0, %v584_v7  ;;  %v589_v21 = vld [vmem:[%s647_s26 + $0x10] ss:$8 sps:$4 sm:$0xff]  }
  0x13   : > { %332 = vmatpush1.bf16.msra.mxu0 %v572_v4  ;;  %552 = vmatpush1.bf16.msra.mxu1 %v572_v4  ;;  %v590_v22 = vld [vmem:[%s647_s26 + $0x30] ss:$8 sps:$4 sm:$0xff]  }
  0x14   : > { %333 = vmatprep.subr.bf16.mxu0 %v599_v1  ;;  %543 = vmatprep.subr.bf16.mxu1 %v599_v1 }
  0x17   : > { %334 = vmatpush1.bf16.msra.mxu0 %v573_v5  ;;  %553 = vmatpush1.bf16.msra.mxu1 %v573_v5 }
  0x18   : > { %335 = vmatprep.subr.bf16.mxu0 %v599_v1  ;;  %544 = vmatprep.subr.bf16.mxu1 %v599_v1 }
  0x1b   : > { %336 = vmatpush1.bf16.msra.mxu0 %v574_v8  ;;  %554 = vmatpush1.bf16.msra.mxu1 %v574_v8 }
  0x1c   : > { %337 = vmatprep.subr.bf16.mxu0 %v599_v1  ;;  %545 = vmatprep.subr.bf16.mxu1 %v599_v1 }
  0x1f   : > { %338 = vmatpush1.bf16.msra.mxu0 %v575_v9  ;;  %555 = vmatpush1.bf16.msra.mxu1 %v575_v9 }
  0x20   : > { %339 = vmatprep.subr.bf16.mxu0 %v599_v1  ;;  %546 = vmatprep.subr.bf16.mxu1 %v599_v1 }
  0x23   : > { %340 = vmatpush1.bf16.msra.mxu0 %v576_v10  ;;  %556 = vmatpush1.bf16.msra.mxu1 %v576_v10 }
  0x24   : > { %341 = vmatprep.subr.bf16.mxu0 %v599_v1  ;;  %547 = vmatprep.subr.bf16.mxu1 %v599_v1 }
  0x27   : > { %342 = vmatpush1.bf16.msra.mxu0 %v577_v13  ;;  %557 = vmatpush1.bf16.msra.mxu1 %v577_v13 }
  0x28   : > { %343 = vmatprep.subr.bf16.mxu0 %v599_v1  ;;  %548 = vmatprep.subr.bf16.mxu1 %v599_v1 }
  0x2b   : > { %344 = vmatpush1.bf16.msra.mxu0 %v323_v16  ;;  %558 = vmatpush1.bf16.msra.mxu1 %v323_v16 }
  0x2e   : > { %358 = vmatmul.mubr.bf16.vlgmr.msra.gmra.mrb[0].mxu0 %v579_v17  ;;  %374 = vmatmul.mubr.bf16.vlgmr.msra.gmra.mrb[0].mxu1 %v582_v18 }
  0x2f   : > { %517 = vmatprep.mubr.msk.bf16.mxu0 %vm305_vm0, %v585_v19  ;;  %519 = vmatprep.mubr.msk.bf16.mxu1 %vm305_vm0, %v587_v20 }
  0x36   : > { %366 = vmatmul.mubr.bf16.gmra.mrb[4].mxu0 %v589_v21  ;;  %382 = vmatmul.mubr.bf16.gmra.mrb[4].mxu1 %v590_v22 }
 0x101   : > { %v359_v24 = vpop.f32.mrb[0].mxu0  ;;  %v375_v25 = vpop.f32.mrb[0].mxu1 }
 0x102   : > { %v360_v26 = vadd.f32 %v497_v23, %v359_v24  ;;  %v376_v27 = vadd.f32 %v497_v23, %v375_v25  ;;  %v361_v28 = vpop.f32.mrb[1].mxu0  ;;  %v377_v29 = vpop.f32.mrb[1].mxu1 }
 0x103   : > { %v362_v30 = vpop.f32.mrb[2].mxu0  ;;  %v378_v31 = vpop.f32.mrb[2].mxu1 }
 0x104   : > { %v531_v32 = vpack.c.bf16 %v360_v26, %v360_v26  ;;  %v535_v33 = vpack.c.bf16 %v376_v27, %v376_v27  ;;  %v363_v34 = vadd.f32 %v497_v23, %v362_v30  ;;  %v379_v35 = vadd.f32 %v497_v23, %v378_v31  ;;  %v364_v36 = vpop.f32.mrb[3].mxu0  ;;  %v380_v37 = vpop.f32.mrb[3].mxu1 }
 0x106   : > { %423 = vst.msk [vmem:[%s686_s18] sm:$0xf] %vm422_vm3, %v531_v32  ;;  %427 = vst.msk [vmem:[%s686_s18 + $0x10] sm:$0xf] %vm422_vm3, %v535_v33  ;;  %v532_v38 = vpack.c.bf16 %v363_v34, %v363_v34  ;;  %v536_v39 = vpack.c.bf16 %v379_v35, %v379_v35 }
 0x108   : > { %424 = vst.msk [vmem:[%s686_s18 + $0x4] sm:$0xf] %vm422_vm3, %v532_v38  ;;  %428 = vst.msk [vmem:[%s686_s18 + $0x14] sm:$0xf] %vm422_vm3, %v536_v39 }
 0x109   : > { %v367_v40 = vpop.f32.mrb[4].mxu0  ;;  %v383_v41 = vpop.f32.mrb[4].mxu1 }
 0x10a   : > { %v368_v42 = vadd.f32 %v497_v23, %v367_v40  ;;  %v384_v43 = vadd.f32 %v497_v23, %v383_v41  ;;  %v369_v44 = vpop.f32.mrb[5].mxu0  ;;  %v385_v45 = vpop.f32.mrb[5].mxu1 }
 0x10b   : > { %v370_v46 = vpop.f32.mrb[6].mxu0  ;;  %v386_v47 = vpop.f32.mrb[6].mxu1 }
 0x10c   : > { %v533_v48 = vpack.c.bf16 %v368_v42, %v368_v42  ;;  %v537_v49 = vpack.c.bf16 %v384_v43, %v384_v43  ;;  %v371_v50 = vadd.f32 %v497_v23, %v370_v46  ;;  %v387_v51 = vadd.f32 %v497_v23, %v386_v47  ;;  %v372_v52 = vpop.f32.mrb[7].mxu0  ;;  %v388_v53 = vpop.f32.mrb[7].mxu1 }
 0x10e   : > { %425 = vst.msk [vmem:[%s686_s18 + $0x8] sm:$0xf] %vm422_vm3, %v533_v48  ;;  %429 = vst.msk [vmem:[%s686_s18 + $0x18] sm:$0xf] %vm422_vm3, %v537_v49  ;;  %v534_v54 = vpack.c.bf16 %v371_v50, %v371_v50  ;;  %v538_v55 = vpack.c.bf16 %v387_v51, %v387_v51 }
 0x110   : > { %426 = vst.msk [vmem:[%s686_s18 + $0xc] sm:$0xf] %vm422_vm3, %v534_v54  ;;  %430 = vst.msk [vmem:[%s686_s18 + $0x1c] sm:$0xf] %vm422_vm3, %v538_v55 }
 0x111 PF: > { %s13_s12 = sadd.s32 1, %s597_s12  }
 0x112   : > { %p10_p4 = scmp.ge.s32.totalorder %s13_s12, 4  }
 0x114   :  { %12 = sbr.rel (!%p10_p4) target bundleno = 1 (0x1), region = 62 }

// kernel: texture_encoder_forward.4
= control target key start
LH: loop header
LB: loop body
LE: loop exit
PB: predicated region body
PF: predicated region fallthrough
CT: control target
= control target key end

     0   :  { %s901_s12 = smov 0   ;;  %s1042_s0 = inlined_call_operand.vmem [shape: bf16[32,576], index: 0, kind: input, shape index: {}]   ;;  %s1043_s1 = inlined_call_operand.vmem [shape: bf16[576,64], index: 1, kind: input, shape index: {}]   ;;  %s1044_s2 = inlined_call_operand.vmem [shape: f32[1,64], index: 2, kind: input, shape index: {}]   ;;  %s1045_s3 = inlined_call_operand.vmem [shape: bf16[32,64], index: 3, kind: output, shape index: {}]  }
   0x1 LB: > { %s698_s13 = sadd.s32 4294967295, %s877_s12   ;;  %p702_p0 = scmp.ge.s32.totalorder %s877_s12, 1  ;;  %s877_s12 = sphi %s901_s12, %s13_s12  }
   0x2   : > { %p139_p1 = scmp.lt.s32.totalorder %s877_s12, 3 }
   0x4   : > { %p140_p2 = pnand %p702_p0, %p139_p1 }
   0x5   : > { %v828_v0 = vld [vmem:[%s1043_s1 + $0x40] sm:$0xff] (!%p140_p2)   ;;  %v832_v4 = vld [vmem:[%s1043_s1 + $0x48] sm:$0xff] (!%p140_p2)   ;;  %v836_v8 = vld [vmem:[%s1043_s1 + $0x50] sm:$0xff] (!%p140_p2)   ;;  %s703_s17 = sshll.u32 (!%p140_p2), %s698_s13, 1  ;;  %v879_v33 = vmov (!%p140_p2), 0.0   ;;  %vm880_vm0 = vmmov (!%p140_p2), 0  }
   0x6   : > { %143 = sbr.rel (%p140_p2) target bundleno = 273 (0x111), region = 32  ;;  %v829_v1 = vld [vmem:[%s1043_s1] sm:$0xff] (!%p140_p2)   ;;  %756 = vmatprep.subr.bf16.mxu0 (!%p140_p2), %v828_v0  ;;  %v833_v5 = vld [vmem:[%s1043_s1 + $0x8] sm:$0xff] (!%p140_p2)   ;;  %v837_v9 = vld [vmem:[%s1043_s1 + $0x10] sm:$0xff] (!%p140_p2)   ;;  %p165_p3 = scmp.lt.s32.totalorder (!%p140_p2), %s703_s17, 3  ;;  %vm504_vm1 = vcmask (!%p140_p2), 523264  }
   0x7   : > { %v830_v2 = vld [vmem:[%s1043_s1 + $0xc0] sm:$0xff] (!%p140_p2)   ;;  %757 = vmatpush3.bf16.msra.mxu0 (!%p140_p2), %v829_v1  ;;  %v834_v6 = vld [vmem:[%s1043_s1 + $0xc8] sm:$0xff] (!%p140_p2)   ;;  %v838_v10 = vld [vmem:[%s1043_s1 + $0xd0] sm:$0xff] (!%p140_p2)   ;;  %vm639_vm2 = vcmask (!%p140_p2), 519168  }
   0x8   : > { %v831_v3 = vld [vmem:[%s1043_s1 + $0x80] sm:$0xff] (!%p140_p2)   ;;  %778 = vmatprep.subr.bf16.mxu1 (!%p140_p2), %v830_v2  ;;  %758 = vmatprep.subr.bf16.mxu0 (!%p140_p2), %v832_v4  ;;  %v835_v7 = vld [vmem:[%s1043_s1 + $0x88] sm:$0xff] (!%p140_p2)   ;;  %v839_v11 = vld [vmem:[%s1043_s1 + $0x90] sm:$0xff] (!%p140_p2)  }
   0x9   : > { %779 = vmatpush3.bf16.msra.mxu1 (!%p140_p2), %v831_v3  ;;  %v840_v12 = vld [vmem:[%s1043_s1 + $0x58] sm:$0xff] (!%p140_p2)   ;;  %v844_v16 = vld [vmem:[%s1043_s1 + $0x60] sm:$0xff] (!%p140_p2)   ;;  %v848_v20 = vld [vmem:[%s1043_s1 + $0x68] sm:$0xff] (!%p140_p2)  }
   0xa   : > { %780 = vmatprep.subr.bf16.mxu1 (!%p140_p2), %v834_v6  ;;  %v841_v13 = vld [vmem:[%s1043_s1 + $0x18] sm:$0xff] (!%p140_p2)   ;;  %v845_v17 = vld [vmem:[%s1043_s1 + $0x20] sm:$0xff] (!%p140_p2)   ;;  %v849_v21 = vld [vmem:[%s1043_s1 + $0x28] sm:$0xff] (!%p140_p2)  }
   0xb   : > { %759 = vmatpush3.bf16.msra.mxu0 (!%p140_p2), %v833_v5  ;;  %v842_v14 = vld [vmem:[%s1043_s1 + $0xd8] sm:$0xff] (!%p140_p2)   ;;  %v846_v18 = vld [vmem:[%s1043_s1 + $0xe0] sm:$0xff] (!%p140_p2)   ;;  %v850_v22 = vld [vmem:[%s1043_s1 + $0xe8] sm:$0xff] (!%p140_p2)  }
   0xc   : > { %760 = vmatprep.subr.bf16.mxu0 (!%p140_p2), %v836_v8  ;;  %v843_v15 = vld [vmem:[%s1043_s1 + $0x98] sm:$0xff] (!%p140_p2)   ;;  %v847_v19 = vld [vmem:[%s1043_s1 + $0xa0] sm:$0xff] (!%p140_p2)   ;;  %v851_v23 = vld [vmem:[%s1043_s1 + $0xa8] sm:$0xff] (!%p140_p2)  }
   0xd   : > { %781 = vmatpush3.bf16.msra.mxu1 %v835_v7  ;;  %s1047_s17 = smov (!%p165_p3, %s703_s17), 3  ;;  %v852_v24 = vld [vmem:[%s1043_s1 + $0x70] sm:$0xff]   ;;  %v856_v28 = vld [vmem:[%s1043_s1 + $0x78] sm:$0xff]   ;;  %v866_v37 = vld [vmem:[%s1043_s1 + $0x100] sm:$0xff]  }
   0xe   : > { %782 = vmatprep.subr.bf16.mxu1 %v838_v10  ;;  %s817_s14 = smul.u32 20, %s1047_s17  ;;  %v853_v25 = vld [vmem:[%s1043_s1 + $0x30] sm:$0xff]   ;;  %v857_v29 = vld [vmem:[%s1043_s1 + $0x38] sm:$0xff]   ;;  %v867_v38 = vld [vmem:[%s1043_s1 + $0x108] sm:$0xff]   ;;  %s706_s18 = sshll.u32 %s1047_s17, 2 }
   0xf   : > { %761 = vmatpush3.bf16.msra.mxu0 %v837_v9  ;;  %v854_v26 = vld [vmem:[%s1043_s1 + $0xf0] sm:$0xff]   ;;  %v858_v30 = vld [vmem:[%s1043_s1 + $0xf8] sm:$0xff]   ;;  %v707_v43 = vld [vmem:[%s1044_s2] ss:$0 sm:$0xff]  ;;  %s175_s21 = scalar_lea.vmem %s1045_s3, %s706_s18 }
  0x10   : > { %762 = vmatprep.subr.bf16.mxu0 %v840_v12  ;;  %v855_v27 = vld [vmem:[%s1043_s1 + $0xb0] sm:$0xff]   ;;  %s1004_s13 = scalar_lea.vmem %s1042_s0, %s817_s14  ;;  %v862_v34 = vld [vmem:[%s1043_s1 + $0xb8] sm:$0xff]  }
  0x11   : > { %783 = vmatpush3.bf16.msra.mxu1 %v839_v11  ;;  %v859_v31 = vld [vmem:[%s1004_s13] ss:$20 sps:$4 sm:$0xff]   ;;  %v861_v32 = vld [vmem:[%s1004_s13 + $0x4] ss:$20 sps:$4 sm:$0xff]   ;;  %v863_v35 = vld [vmem:[%s1004_s13 + $0x8] ss:$20 sps:$4 sm:$0xff]  }
  0x12   : > { %784 = vmatprep.subr.bf16.mxu1 %v842_v14  ;;  %540 = vmatprep.mubr.bf16.mxu0 %v861_v32  ;;  %v865_v36 = vld [vmem:[%s1004_s13 + $0xc] ss:$20 sps:$4 sm:$0xff]   ;;  %v868_v39 = vld [vmem:[%s1043_s1 + $0x110] sm:$0xff]   ;;  %v869_v40 = vld [vmem:[%s1043_s1 + $0x118] sm:$0xff]  }
  0x13   : > { %763 = vmatpush3.bf16.msra.mxu0 %v841_v13  ;;  %581 = vmatprep.mubr.bf16.mxu1 %v865_v36  ;;  %v870_v41 = vld [vmem:[%s1004_s13 + $0x10] ss:$20 sps:$4 sm:$0xff]  }
  0x14   : > { %764 = vmatprep.subr.bf16.mxu0 %v844_v16 }
  0x15   : > { %785 = vmatpush3.bf16.msra.mxu1 %v843_v15 }
  0x16   : > { %786 = vmatprep.subr.bf16.mxu1 %v846_v18 }
  0x17   : > { %765 = vmatpush3.bf16.msra.mxu0 %v845_v17 }
  0x18   : > { %766 = vmatprep.subr.bf16.mxu0 %v848_v20 }
  0x19   : > { %787 = vmatpush3.bf16.msra.mxu1 %v847_v19 }
  0x1a   : > { %788 = vmatprep.subr.bf16.mxu1 %v850_v22 }
  0x1b   : > { %767 = vmatpush3.bf16.msra.mxu0 %v849_v21 }
  0x1c   : > { %768 = vmatprep.subr.bf16.mxu0 %v852_v24 }
  0x1d   : > { %789 = vmatpush3.bf16.msra.mxu1 %v851_v23 }
  0x1e   : > { %790 = vmatprep.subr.bf16.mxu1 %v854_v26 }
  0x1f   : > { %769 = vmatpush3.bf16.msra.mxu0 %v853_v25 }
  0x20   : > { %770 = vmatprep.subr.bf16.mxu0 %v856_v28 }
  0x21   : > { %791 = vmatpush3.bf16.msra.mxu1 %v855_v27 }
  0x22   : > { %792 = vmatprep.subr.bf16.mxu1 %v858_v30 }
  0x23   : > { %771 = vmatpush3.bf16.msra.mxu0 %v857_v29 }
  0x24   : > { %805 = vmatprep.subr.bf16.mxu0 %v879_v33 }
  0x25   : > { %793 = vmatpush3.bf16.msra.mxu1 %v862_v34 }
  0x26   : > { %541 = vmatmul.mubr.bf16.vlgmr.msra.gmra.mrb[0].mxu0 %v859_v31 }
  0x27   : > { %813 = vmatprep.mubr.msk.bf16.mxu0 %vm880_vm0, %v879_v33  ;;  %806 = vmatpush3.bf16.msra.mxu0 %v866_v37 }
  0x28   : > { %582 = vmatmul.mubr.bf16.vlgmr.msra.gmra.mrb[0].mxu1 %v863_v35  ;;  %807 = vmatprep.subr.bf16.mxu0 %v879_v33 }
  0x2b   : > { %808 = vmatpush3.bf16.msra.mxu0 %v867_v38 }
  0x2c   : > { %809 = vmatprep.subr.bf16.mxu0 %v879_v33 }
  0x2f   : > { %810 = vmatpush3.bf16.msra.mxu0 %v868_v39 }
  0x30   : > { %811 = vmatprep.subr.bf16.mxu0 %v879_v33 }
  0x33   : > { %812 = vmatpush3.bf16.msra.mxu0 %v869_v40 }
  0x36   : > { %814 = vmatmul.mubr.msk.bf16.vlgmr.msra.gmra.mrb[4].mxu0 %vm504_vm1, %v870_v41 }
  0xf9   : > { %v772_v42 = vpop.f32.mrb[0].mxu0 }
  0xfa   : > { %v773_v44 = vpop.f32.mrb[1].mxu0 }
  0xfb   : > { %v774_v45 = vadd.f32 %v773_v44, %v772_v42  ;;  %v775_v46 = vpop.f32.mrb[2].mxu0  ;;  %v794_v47 = vpop.f32.mrb[0].mxu1 }
  0xfc   : > { %v776_v48 = vpop.f32.mrb[3].mxu0  ;;  %v795_v51 = vpop.f32.mrb[1].mxu1 }
  0xfd   : > { %v543_v49 = vadd.f32 %v774_v45, %v707_v43  ;;  %v777_v50 = vadd.f32 %v776_v48, %v775_v46  ;;  %v796_v52 = vadd.f32 %v795_v51, %v794_v47  ;;  %v797_v53 = vpop.f32.mrb[2].mxu1 }
  0xfe   : > { %v798_v55 = vpop.f32.mrb[3].mxu1 }
  0xff   : > { %v546_v54 = vadd.f32 %v777_v50, %v707_v43  ;;  %v799_v56 = vadd.f32 %v798_v55, %v797_v53  ;;  %v584_v57 = vadd.f32 %v796_v52, %v543_v49 }
 0x101   : > { %v587_v58 = vadd.f32 %v799_v56, %v546_v54 }
 0x109   : > { %v624_v59 = vpop.f32.mrb[4].mxu0 }
 0x10a   : > { %v625_v60 = vadd.f32 %v624_v59, %v584_v57  ;;  %v815_v61 = vpop.f32.mrb[5].mxu0 }
 0x10b   : > { %v627_v62 = vpop.f32.mrb[6].mxu0 }
 0x10c   : > { %v754_v63 = vpack.c.bf16 %v625_v60, %v625_v60  ;;  %v628_v0 = vadd.f32 %v627_v62, %v587_v58  ;;  %v816_v1 = vpop.f32.mrb[7].mxu0 }
 0x10e   : > { %640 = vst.msk [vmem:[%s175_s21] sm:$0xf] %vm639_vm2, %v754_v63  ;;  %v755_v2 = vpack.c.bf16 %v628_v0, %v628_v0 }
 0x110   : > { %641 = vst.msk [vmem:[%s175_s21 + $0x4] sm:$0xf] %vm639_vm2, %v755_v2 }
 0x111 PF: > { %s13_s12 = sadd.s32 1, %s877_s12  }
 0x112   : > { %p10_p4 = scmp.ge.s32.totalorder %s13_s12, 4  }
 0x114   :  { %12 = sbr.rel (!%p10_p4) target bundleno = 1 (0x1), region = 62 }

// kernel: texture_encoder_forward.5
= control target key start
LH: loop header
LB: loop body
LE: loop exit
PB: predicated region body
PF: predicated region fallthrough
CT: control target
= control target key end

     0   :  { %s859_s0 = inlined_call_operand.vmem [shape: bf16[8,576], index: 0, kind: input, shape index: {}]   ;;  %s860_s1 = inlined_call_operand.vmem [shape: bf16[576,32], index: 1, kind: input, shape index: {}]   ;;  %s861_s2 = inlined_call_operand.vmem [shape: f32[1,32], index: 2, kind: input, shape index: {}]   ;;  %s862_s3 = inlined_call_operand.vmem [shape: f32[1,32], index: 3, kind: input, shape index: {}]   ;;  %s863_s4 = inlined_call_operand.<no memory space> [shape: f32[1,1], index: 4, kind: input, shape index: {}]   ;;  %s864_s5 = inlined_call_operand.hbm [shape: f32[8,32], index: 5, kind: output, shape index: {0}]   ;;  %s865_s6 = inlined_call_operand.vmem [shape: f32[8,1], index: 6, kind: output, shape index: {1}]  }
   0x1   :  { %v12_v0 = vstv %s863_s4 }
   0x2   :  { %13 = vst [vmem:[#allocation2] sm:$0x1] %v12_v0 }
   0x3   :  { %v615_v1 = vld [vmem:[%s860_s1 + $0x40] sm:$0xff]   ;;  %v619_v5 = vld [vmem:[%s860_s1 + $0x48] sm:$0xff]   ;;  %v623_v9 = vld [vmem:[%s860_s1 + $0x50] sm:$0xff]   ;;  %v680_v36 = vmov 0.0   ;;  %vm681_vm0 = vmmov 0  }
   0x4   :  { %v616_v2 = vld [vmem:[%s860_s1] sm:$0xff]   ;;  %551 = vmatprep.subr.bf16.mxu0 %v615_v1  ;;  %v620_v6 = vld [vmem:[%s860_s1 + $0x8] sm:$0xff]   ;;  %v624_v10 = vld [vmem:[%s860_s1 + $0x10] sm:$0xff]  }
   0x5   :  { %v617_v3 = vld [vmem:[%s860_s1 + $0xc0] sm:$0xff]   ;;  %552 = vmatpush3.bf16.msra.mxu0 %v616_v2  ;;  %v621_v7 = vld [vmem:[%s860_s1 + $0xc8] sm:$0xff]   ;;  %v625_v11 = vld [vmem:[%s860_s1 + $0xd0] sm:$0xff]  }
   0x6   :  { %v618_v4 = vld [vmem:[%s860_s1 + $0x80] sm:$0xff]   ;;  %573 = vmatprep.subr.bf16.mxu1 %v617_v3  ;;  %553 = vmatprep.subr.bf16.mxu0 %v619_v5  ;;  %v622_v8 = vld [vmem:[%s860_s1 + $0x88] sm:$0xff]   ;;  %v626_v12 = vld [vmem:[%s860_s1 + $0x90] sm:$0xff]  }
   0x7   :  { %574 = vmatpush3.bf16.msra.mxu1 %v618_v4  ;;  %v627_v13 = vld [vmem:[%s860_s1 + $0x58] sm:$0xff]   ;;  %v631_v17 = vld [vmem:[%s860_s1 + $0x60] sm:$0xff]   ;;  %v635_v21 = vld [vmem:[%s860_s1 + $0x68] sm:$0xff]  }
   0x8   :  { %575 = vmatprep.subr.bf16.mxu1 %v621_v7  ;;  %v628_v14 = vld [vmem:[%s860_s1 + $0x18] sm:$0xff]   ;;  %v632_v18 = vld [vmem:[%s860_s1 + $0x20] sm:$0xff]   ;;  %v636_v22 = vld [vmem:[%s860_s1 + $0x28] sm:$0xff]  }
   0x9   :  { %554 = vmatpush3.bf16.msra.mxu0 %v620_v6  ;;  %v629_v15 = vld [vmem:[%s860_s1 + $0xd8] sm:$0xff]   ;;  %v633_v19 = vld [vmem:[%s860_s1 + $0xe0] sm:$0xff]   ;;  %v637_v23 = vld [vmem:[%s860_s1 + $0xe8] sm:$0xff]  }
   0xa   :  { %555 = vmatprep.subr.bf16.mxu0 %v623_v9  ;;  %v630_v16 = vld [vmem:[%s860_s1 + $0x98] sm:$0xff]   ;;  %v634_v20 = vld [vmem:[%s860_s1 + $0xa0] sm:$0xff]   ;;  %v638_v24 = vld [vmem:[%s860_s1 + $0xa8] sm:$0xff]  }
   0xb   :  { %576 = vmatpush3.bf16.msra.mxu1 %v622_v8  ;;  %v639_v25 = vld [vmem:[%s860_s1 + $0x70] sm:$0xff]   ;;  %v643_v29 = vld [vmem:[%s860_s1 + $0x78] sm:$0xff]   ;;  %v26_v32 = vld [vmem:[%s859_s0] sm:$0xff] }
   0xc   :  { %577 = vmatprep.subr.bf16.mxu1 %v625_v11  ;;  %v640_v26 = vld [vmem:[%s860_s1 + $0x30] sm:$0xff]   ;;  %v644_v30 = vld [vmem:[%s860_s1 + $0x38] sm:$0xff]   ;;  %v507_v33 = vcombine.low %v26_v32, %v26_v32  ;;  %v508_v34 = vcombine.high %v26_v32, %v26_v32  ;;  %v27_v37 = vld [vmem:[%s859_s0 + $0x8] sm:$0xff] }
   0xd   :  { %556 = vmatpush3.bf16.msra.mxu0 %v624_v10  ;;  %v641_v27 = vld [vmem:[%s860_s1 + $0xf0] sm:$0xff]   ;;  %v645_v31 = vld [vmem:[%s860_s1 + $0xf8] sm:$0xff]   ;;  %v509_v38 = vcombine.low %v27_v37, %v27_v37  ;;  %v510_v39 = vcombine.high %v27_v37, %v27_v37  ;;  %v651_v40 = vld [vmem:[%s860_s1 + $0x100] sm:$0xff]  }
   0xe   :  { %557 = vmatprep.subr.bf16.mxu0 %v627_v13  ;;  %v642_v28 = vld [vmem:[%s860_s1 + $0xb0] sm:$0xff]   ;;  %v648_v35 = vld [vmem:[%s860_s1 + $0xb8] sm:$0xff]   ;;  %377 = vmatprep.mubr.bf16.mxu0 %v508_v34  ;;  %v652_v41 = vld [vmem:[%s860_s1 + $0x108] sm:$0xff]  }
   0xf   :  { %578 = vmatpush3.bf16.msra.mxu1 %v626_v12  ;;  %417 = vmatprep.mubr.bf16.mxu1 %v510_v39 }
  0x10   :  { %579 = vmatprep.subr.bf16.mxu1 %v629_v15 }
  0x11   :  { %558 = vmatpush3.bf16.msra.mxu0 %v628_v14 }
  0x12   :  { %559 = vmatprep.subr.bf16.mxu0 %v631_v17 }
  0x13   :  { %580 = vmatpush3.bf16.msra.mxu1 %v630_v16 }
  0x14   :  { %581 = vmatprep.subr.bf16.mxu1 %v633_v19 }
  0x15   :  { %560 = vmatpush3.bf16.msra.mxu0 %v632_v18 }
  0x16   :  { %561 = vmatprep.subr.bf16.mxu0 %v635_v21 }
  0x17   :  { %582 = vmatpush3.bf16.msra.mxu1 %v634_v20 }
  0x18   :  { %583 = vmatprep.subr.bf16.mxu1 %v637_v23 }
  0x19   :  { %562 = vmatpush3.bf16.msra.mxu0 %v636_v22 }
  0x1a   :  { %563 = vmatprep.subr.bf16.mxu0 %v639_v25 }
  0x1b   :  { %584 = vmatpush3.bf16.msra.mxu1 %v638_v24 }
  0x1c   :  { %585 = vmatprep.subr.bf16.mxu1 %v641_v27 }
  0x1d   :  { %564 = vmatpush3.bf16.msra.mxu0 %v640_v26 }
  0x1e   :  { %565 = vmatprep.subr.bf16.mxu0 %v643_v29 }
  0x1f   :  { %586 = vmatpush3.bf16.msra.mxu1 %v642_v28 }
  0x20   :  { %587 = vmatprep.subr.bf16.mxu1 %v645_v31 }
  0x21   :  { %566 = vmatpush3.bf16.msra.mxu0 %v644_v30 }
  0x22   :  { %600 = vmatprep.subr.bf16.mxu0 %v680_v36 }
  0x23   :  { %588 = vmatpush3.bf16.msra.mxu1 %v648_v35 }
  0x24   :  { %378 = vmatmul.mubr.bf16.vlgmr.msra.gmra.mrb[0].mxu0 %v507_v33 }
  0x25   :  { %601 = vmatpush3.bf16.msra.mxu0 %v651_v40  ;;  %608 = vmatprep.mubr.msk.bf16.mxu0 %vm681_vm0, %v680_v36 }
  0x26   :  { %418 = vmatmul.mubr.bf16.vlgmr.msra.gmra.mrb[0].mxu1 %v509_v38  ;;  %602 = vmatprep.subr.bf16.mxu0 %v680_v36 }
  0x27   :  { %14 = vsyncpa [#allocation4], 0  ;;  %v653_v42 = vld [vmem:[%s860_s1 + $0x110] sm:$0xff]   ;;  %v654_v43 = vld [vmem:[%s860_s1 + $0x118] sm:$0xff]   ;;  %vm341_vm1 = vcmask 523264   ;;  %vm465_vm2 = vcmask 261120  }
  0x28   :  { %v655_v44 = vld [vmem:[%s859_s0 + $0x10] ss:$0 sps:$4 sm:$0xff]   ;;  %v506_v46 = vld [vmem:[%s861_s2] ss:$0 sm:$0xff]  ;;  %s682_s2 = smov [#allocation3]  }
  0x29   :  { %603 = vmatpush3.bf16.msra.mxu0 %v652_v41  ;;  %v549_v59 = vld [vmem:[%s862_s3] ss:$0 sm:$0xff]  ;;  %s494_s28 = sshll.u32 %s682_s2, 4  ;;  %s495_s28 = int_to_ptr.vmem [resolvable:$true] %s494_s28 }
  0x2a   :  { %604 = vmatprep.subr.bf16.mxu0 %v680_v36  ;;  %s656_s29 = scalar_lea.vmem %s495_s28, 128  ;;  %p661_p1 = scmp.lt.s32.totalorder %s495_s28, %s495_s28 }
  0x2b   :  { %p657_p0 = scmp.ne.s32.totalorder %s495_s28, %s656_s29  ;;  %p662_p2 = scmp.lt.s32.totalorder %s656_s29, %s656_s29 }
  0x2d   :  { %605 = vmatpush3.bf16.msra.mxu0 %v653_v42  ;;  %p663_p3 = por %p662_p2, %p661_p1 }
  0x2e   :  { %606 = vmatprep.subr.bf16.mxu0 %v680_v36 }
  0x2f   :  { %p664_p4 = pnand %p663_p3, %p657_p0 }
  0x31   :  { %607 = vmatpush3.bf16.msra.mxu0 %v654_v43 }
  0x34   :  { %609 = vmatmul.mubr.msk.bf16.vlgmr.msra.gmra.mrb[4].mxu0 %vm341_vm1, %v655_v44 }
  0xf7   :  { %v567_v45 = vpop.f32.mrb[0].mxu0 }
  0xf8   :  { %v568_v47 = vpop.f32.mrb[1].mxu0 }
  0xf9   :  { %v569_v48 = vadd.f32 %v568_v47, %v567_v45  ;;  %v570_v49 = vpop.f32.mrb[2].mxu0  ;;  %v589_v50 = vpop.f32.mrb[0].mxu1 }
  0xfa   :  { %v571_v51 = vpop.f32.mrb[3].mxu0  ;;  %v590_v52 = vpop.f32.mrb[1].mxu1 }
  0xfb   :  { %v380_v53 = vadd.f32 %v569_v48, %v506_v46  ;;  %v591_v54 = vadd.f32 %v590_v52, %v589_v50  ;;  %v592_v55 = vpop.f32.mrb[2].mxu1 }
  0xfc   :  { %v593_v56 = vpop.f32.mrb[3].mxu1 }
  0xfd   :  { %v420_v57 = vadd.f32 %v591_v54, %v380_v53 }
 0x107   :  { %v459_v58 = vpop.f32.mrb[4].mxu0 }
 0x108   :  { %v460_v60 = vadd.f32 %v459_v58, %v420_v57  ;;  %v610_v61 = vpop.f32.mrb[5].mxu0 }
 0x109   :  { %v462_v62 = vpop.f32.mrb[6].mxu0 }
 0x10a   :  { %v611_v63 = vpop.f32.mrb[7].mxu0  ;;  %v474_v0 = vmul.f32 %v549_v59, %v460_v60  ;;  %466 = vst.msk [vmem:[#allocation3] sm:$0xff] %vm465_vm2, %v460_v60 }
 0x10c   :  { %v475_v1 = vsel %vm465_vm2, %v474_v0, 0.0 }
 0x10d   :  { %476 = vadd.xlane.f32.xlu0 %v475_v1 }
 0x10e   :  { %667 = shalt.err (!%p664_p4)
}
 0x10f   :  { %s668_s4 = scalar_lea.hbm %s864_s5, 128 }
 0x110   :  { %p669_p5 = scmp.ne.s32.totalorder %s864_s5, %s668_s4  ;;  %p672_p6 = scmp.lt.u32.totalorder %s668_s4, %s864_s5 }
 0x112   :  { %p674_p7 = pnand %p672_p6, %p669_p5 }
 0x114   :  { %677 = shalt.err (!%p674_p7)
}
 0x115   :  { %497 = dma.vmem_to_hbm [thread:$0]  %s495_s28, 128, %s864_s5, [#allocation4]   ;;  %v550_v2 = vld [vmem:[#allocation2] ss:$0 sm:$0xff]  ;;  %vm486_vm3 = vcmask 7168  }
 0x19a   :  { %v477_v3 = vpop.xlane.xlu0 %476 }
 0x19b   :  { %v485_v4 = vadd.f32 %v550_v2, %v477_v3 }
 0x19d   :  { %487 = vst.msk [vmem:[%s865_s6] sm:$0xff] %vm486_vm3, %v485_v4 }
 0x19e   :  { %678 = dma.done.wait [#allocation4], 128  }
 0x19f   :  { %679 = vsyncadd [#allocation4], 4294967168 }
 0x1a0   :  { %505 = vsyncpa [#allocation4], 1 }

</bundles_post_ra>
